<compile_context>
chip_gen: v7x
topology: tpu7x:2x2x1
jax: 0.10.0
libtpu: 0.0.40
codegen_flags: <defaults>
</compile_context>

<pallas_src>
import functools

import jax
import jax.numpy as jnp
from jax import lax
from jax.experimental import pallas as pl
from jax.experimental.pallas import tpu as pltpu


# -----------------------------------------------------------------------------
# Pallas kernel: fused bidirectional LSTM + output Linear
# -----------------------------------------------------------------------------
def _bilstm_kernel(emb2_ref,     # (S*Bp, 2E) bf16: row block t = [x[t] | x[S-1-t]]
                   wih_ref,      # (2E, 8H)   bf16 block-diag, interleaved gate cols
                   whh_ref,      # (2H, 8H)   bf16 block-diag, interleaved gate cols
                   b_ref,        # (1, 8H)    f32 fused biases (ih+hh), interleaved
                   wfc_ref,      # (2H, Op)   bf16 fc weight^T, lane-padded to 128
                   bfc_ref,      # (1, Op)    f32
                   pred_ref,     # (S*Bp, Op) f32 output
                   gates_vmem,   # scratch (S*Bp, 8H) f32
                   h_vmem,       # scratch (S*Bp, 2H) f32
                   *, seq, bp, hidden_dim):
    S, Bp, H = seq, bp, hidden_dim

    # ---- Input projection: both directions, all timesteps, one bf16 matmul.
    # Because emb2 row block t = [x[t] | x[S-1-t]] and wih is block-diagonal,
    # row block t of the result already holds fwd gates of x[t] and bwd gates
    # of x[S-1-t] in the interleaved lane layout.  Result goes to VMEM scratch
    # (not vregs) so the unrolled recurrence does not spill.
    gates_vmem[...] = (
        jnp.dot(emb2_ref[...], wih_ref[...],
                preferred_element_type=jnp.float32) + b_ref[...])

    # Only weight held resident across the recurrence (bf16 -> 8 vregs).
    whh = whh_ref[...]

    h_cat = jnp.zeros((Bp, 2 * H), jnp.float32)     # [h_f | h_b]
    c_cat = jnp.zeros((Bp, 2 * H), jnp.float32)     # [c_f | c_b]
    for s in range(S):
        # (Bp, 8H) gate pre-activations for this step: one contiguous VMEM read.
        g_in = gates_vmem[s * Bp:(s + 1) * Bp, :]
        # single 256-lane recurrent matmul updates both directions (bf16 MXU).
        gates = jnp.dot(h_cat.astype(jnp.bfloat16), whh,
                        preferred_element_type=jnp.float32) + g_in
        # sigmoid only on i/f/o lanes, tanh only on g lanes.
        sg = jax.nn.sigmoid(gates[:, 0:6 * H])
        tg = jnp.tanh(gates[:, 6 * H:8 * H])
        # fused cell/hidden update for both directions (2H-wide slices).
        c_cat = sg[:, 2 * H:4 * H] * c_cat + sg[:, 0:2 * H] * tg
        h_cat = sg[:, 4 * H:6 * H] * jnp.tanh(c_cat)
        # h history -> VMEM scratch at the time position each half belongs to:
        # fwd half is the output at time s, bwd half the output at time S-1-s.
        h_vmem[s * Bp:(s + 1) * Bp, 0:H] = h_cat[:, 0:H]
        h_vmem[(S - 1 - s) * Bp:(S - s) * Bp, H:2 * H] = h_cat[:, H:2 * H]

    # ---- Final Linear: one bf16 matmul + single lane-dense store ------------
    pred_ref[...] = (
        jnp.dot(h_vmem[...].astype(jnp.bfloat16), wfc_ref[...],
                preferred_element_type=jnp.float32) + bfc_ref[...])


def bilstm_pallas(emb2, wih, whh, b, wfc, bfc, *, seq, bp, hidden_dim):
    op = wfc.shape[1]
    kernel = functools.partial(_bilstm_kernel, seq=seq, bp=bp,
                               hidden_dim=hidden_dim)
    vmem = pl.BlockSpec(memory_space=pltpu.MemorySpace.VMEM)
    return pl.pallas_call(
        kernel,
        out_shape=jax.ShapeDtypeStruct((seq * bp, op), jnp.float32),
        in_specs=[vmem] * 6,
        out_specs=vmem,
        scratch_shapes=[
            pltpu.VMEM((seq * bp, 8 * hidden_dim), jnp.float32),
            pltpu.VMEM((seq * bp, 2 * hidden_dim), jnp.float32),
        ],
    )(emb2, wih, whh, b, wfc, bfc)


# -----------------------------------------------------------------------------
# Parameter init (deterministic, PyTorch-shaped), one-time packing, glue
# -----------------------------------------------------------------------------
def init_params(key, input_dim, embedding_dim, hidden_dim, output_dim, pad_idx):
    ks = jax.random.split(key, 11)
    kH = 1.0 / jnp.sqrt(hidden_dim)

    def u(k, shape, bound):
        return jax.random.uniform(k, shape, jnp.float32, -bound, bound)

    emb_table = jax.random.normal(ks[0], (input_dim, embedding_dim), jnp.float32)
    emb_table = emb_table.at[pad_idx].set(0.0)   # padding_idx row is zero

    return dict(
        emb_table=emb_table,
        wih_f=u(ks[1], (4 * hidden_dim, embedding_dim), kH),
        whh_f=u(ks[2], (4 * hidden_dim, hidden_dim), kH),
        bih_f=u(ks[3], (4 * hidden_dim,), kH),
        bhh_f=u(ks[4], (4 * hidden_dim,), kH),
        wih_b=u(ks[5], (4 * hidden_dim, embedding_dim), kH),
        whh_b=u(ks[6], (4 * hidden_dim, hidden_dim), kH),
        bih_b=u(ks[7], (4 * hidden_dim,), kH),
        bhh_b=u(ks[8], (4 * hidden_dim,), kH),
        wfc=u(ks[9], (output_dim, 2 * hidden_dim), 1.0 / jnp.sqrt(2 * hidden_dim)),
        bfc=u(ks[10], (output_dim,), 1.0 / jnp.sqrt(2 * hidden_dim)),
    )


def _interleave_gate_cols(w_fwd_T, w_bwd_T, H):
    """(K,4H) per direction with cols [i|f|g|o] -> (K,8H) interleaved
    [i_f|i_b|f_f|f_b|o_f|o_b|g_f|g_b] (tanh 'g' lanes last)."""
    blk = lambda w, j: w[:, j * H:(j + 1) * H]
    return jnp.concatenate(
        [blk(w_fwd_T, 0), blk(w_bwd_T, 0),     # i
         blk(w_fwd_T, 1), blk(w_bwd_T, 1),     # f
         blk(w_fwd_T, 3), blk(w_bwd_T, 3),     # o
         blk(w_fwd_T, 2), blk(w_bwd_T, 2)],    # g  (last 2H lanes)
        axis=1)


def pack_params(params, *, hidden_dim, output_dim):
    """One-time weight packing (kept OUT of the per-call forward)."""
    H = hidden_dim
    E = params["wih_f"].shape[1]
    Op = ((output_dim + 127) // 128) * 128
    z_e = jnp.zeros((E, 4 * H), jnp.float32)
    z_h = jnp.zeros((H, 4 * H), jnp.float32)

    # input projection: block-diagonal over the [x[t] | x[S-1-t]] input cols.
    wih = jnp.concatenate(
        [_interleave_gate_cols(params["wih_f"].T, z_e, H),
         _interleave_gate_cols(z_e, params["wih_b"].T, H)], axis=0)   # (2E,8H)
    # recurrent weights: block-diagonal over [h_f | h_b].
    whh = jnp.concatenate(
        [_interleave_gate_cols(params["whh_f"].T, z_h, H),
         _interleave_gate_cols(z_h, params["whh_b"].T, H)], axis=0)   # (2H,8H)
    b = _interleave_gate_cols(
        (params["bih_f"] + params["bhh_f"]).reshape(1, 4 * H),
        (params["bih_b"] + params["bhh_b"]).reshape(1, 4 * H), H)     # (1,8H)
    wfc = jnp.zeros((2 * H, Op), jnp.float32).at[:, :output_dim].set(
        params["wfc"].T)
    bfc = jnp.zeros((1, Op), jnp.float32).at[:, :output_dim].set(params["bfc"])
    return dict(wih=wih.astype(jnp.bfloat16), whh=whh.astype(jnp.bfloat16),
                b=b, wfc=wfc.astype(jnp.bfloat16), bfc=bfc)


def bilstm_forward(text, emb_table, packed, *, hidden_dim, output_dim):
    H = hidden_dim
    # Embedding lookup + dropout (identity in eval) are glue; rest is Pallas.
    emb = emb_table[text]                                 # (S, B, E) f32
    S, B, E = emb.shape
    Bp = ((B + 7) // 8) * 8                               # sublane-pad batch to 8
    emb_p = jnp.pad(emb, ((0, 0), (0, Bp - B), (0, 0)))
    # row block t = [x[t] | x[S-1-t]] so the kernel never mixes row blocks.
    emb2 = jnp.concatenate([emb_p, emb_p[::-1]], axis=-1)
    emb2 = emb2.reshape(S * Bp, 2 * E).astype(jnp.bfloat16)

    pred = bilstm_pallas(emb2, packed["wih"], packed["whh"], packed["b"],
                         packed["wfc"], packed["bfc"],
                         seq=S, bp=Bp, hidden_dim=H)
    Op = packed["wfc"].shape[1]
    return pred.reshape(S, Bp, Op)[:, :B, :output_dim]


# -----------------------------------------------------------------------------
# Pure-JAX f32 reference (matches torch semantics) for verification
# -----------------------------------------------------------------------------
def bilstm_reference(text, params, *, hidden_dim):
    emb = params["emb_table"][text]
    batch = text.shape[1]
    h0 = jnp.zeros((batch, hidden_dim), jnp.float32)
    c0 = jnp.zeros_like(h0)

    def make_cell(wih, whh, b):
        def cell(carry, x_t):
            h, c = carry
            gates = x_t @ wih.T + h @ whh.T + b
            i, f, g, o = jnp.split(gates, 4, axis=-1)
            c = jax.nn.sigmoid(f) * c + jax.nn.sigmoid(i) * jnp.tanh(g)
            h = jax.nn.sigmoid(o) * jnp.tanh(c)
            return (h, c), h
        return cell

    _, out_f = lax.scan(
        make_cell(params["wih_f"], params["whh_f"],
                  params["bih_f"] + params["bhh_f"]), (h0, c0), emb)
    _, out_b_rev = lax.scan(
        make_cell(params["wih_b"], params["whh_b"],
                  params["bih_b"] + params["bhh_b"]), (h0, c0), emb[::-1])
    out = jnp.concatenate([out_f, out_b_rev[::-1]], axis=-1)
    return out @ params["wfc"].T + params["bfc"]


if __name__ == "__main__":
    # Small, module-consistent shapes
    INPUT_DIM = 50       # vocab size
    EMB_DIM = 32
    HIDDEN_DIM = 32      # 4*H = 128 -> lane-aligned gate blocks
    OUTPUT_DIM = 4
    PAD_IDX = 0
    SEQ_LEN = 8
    BATCH = 2

    root = jax.random.PRNGKey(0)
    k_param, k_text = jax.random.split(root)

    params = init_params(k_param, INPUT_DIM, EMB_DIM, HIDDEN_DIM,
                         OUTPUT_DIM, PAD_IDX)
    text = jax.random.randint(k_text, (SEQ_LEN, BATCH), 0, INPUT_DIM,
                              dtype=jnp.int32)

    # One-time weight packing (outside the hot path).
    packed = jax.tree_util.tree_map(
        jax.block_until_ready,
        pack_params(params, hidden_dim=HIDDEN_DIM, output_dim=OUTPUT_DIM))

    fwd = jax.jit(functools.partial(bilstm_forward, hidden_dim=HIDDEN_DIM,
                                    output_dim=OUTPUT_DIM))
    pred = jax.block_until_ready(fwd(text, params["emb_table"], packed))

    ref = bilstm_reference(text, params, hidden_dim=HIDDEN_DIM)
    assert pred.shape == (SEQ_LEN, BATCH, OUTPUT_DIM)
    err = float(jnp.max(jnp.abs(pred - ref)))
    # bf16 MXU operands (per perf review) -> verify at a bf16-appropriate tol.
    assert err < 2e-2, "max abs err %g" % err
    print("KERNEL_OK")
</pallas_src>

<mosaic_0001>
module attributes {stable_mosaic.version = 11 : i64} {
  func.func @_bilstm_kernel(%arg0: memref<64x64xbf16, #tpu.memory_space<vmem>>, %arg1: memref<64x256xbf16, #tpu.memory_space<vmem>>, %arg2: memref<64x256xbf16, #tpu.memory_space<vmem>>, %arg3: memref<1x256xf32, #tpu.memory_space<vmem>>, %arg4: memref<64x128xbf16, #tpu.memory_space<vmem>>, %arg5: memref<1x128xf32, #tpu.memory_space<vmem>>, %arg6: memref<64x128xf32, #tpu.memory_space<vmem>>, %arg7: memref<64x256xf32, #tpu.memory_space<vmem>>, %arg8: memref<64x64xf32, #tpu.memory_space<vmem>>) attributes {dimension_semantics = [], scalar_prefetch = 0 : i64, scratch_operands = 2 : i64, tpu.core_type = #tpu.core_type<tc>} {
    %c0 = arith.constant 0 : index
    %c0_0 = arith.constant 0 : index
    %0 = vector.load %arg0[%c0, %c0_0] : memref<64x64xbf16, #tpu.memory_space<vmem>>, vector<64x64xbf16>
    %c0_1 = arith.constant 0 : index
    %c0_2 = arith.constant 0 : index
    %1 = vector.load %arg1[%c0_1, %c0_2] : memref<64x256xbf16, #tpu.memory_space<vmem>>, vector<64x256xbf16>
    %cst = arith.constant dense<0.000000e+00> : vector<64x256xf32>
    %2 = tpu.matmul %0, %1, %cst {dimension_numbers = #tpu.dot_dimension_numbers<[1], [0], [0], [1], [0, 0, 1, 1], [], []>} : vector<64x64xbf16>, vector<64x256xbf16>, vector<64x256xf32> -> vector<64x256xf32>
    %c0_3 = arith.constant 0 : index
    %c0_4 = arith.constant 0 : index
    %3 = vector.load %arg3[%c0_3, %c0_4] : memref<1x256xf32, #tpu.memory_space<vmem>>, vector<1x256xf32>
    %4 = vector.broadcast %3 : vector<1x256xf32> to vector<64x256xf32>
    %5 = arith.addf %2, %4 : vector<64x256xf32>
    %c0_5 = arith.constant 0 : index
    %c0_6 = arith.constant 0 : index
    %6 = vector.load %arg7[%c0_5, %c0_6] : memref<64x256xf32, #tpu.memory_space<vmem>>, vector<64x256xf32>
    tpu.vector_store %arg7[%c0_5, %c0_6], %5 {strides = array<i32>} : memref<64x256xf32, #tpu.memory_space<vmem>>, vector<64x256xf32>,
    %c0_7 = arith.constant 0 : index
    %c0_8 = arith.constant 0 : index
    %7 = vector.load %arg2[%c0_7, %c0_8] : memref<64x256xbf16, #tpu.memory_space<vmem>>, vector<64x256xbf16>
    %cst_9 = arith.constant 0.000000e+00 : f32
    %8 = vector.broadcast %cst_9 : f32 to vector<8x64xf32>
    %cst_10 = arith.constant 0.000000e+00 : f32
    %9 = vector.broadcast %cst_10 : f32 to vector<8x64xf32>
    %c0_11 = arith.constant 0 : index
    %c0_12 = arith.constant 0 : index
    %10 = vector.load %arg7[%c0_11, %c0_12] : memref<64x256xf32, #tpu.memory_space<vmem>>, vector<8x256xf32>
    %11 = arith.truncf %8 : vector<8x64xf32> to vector<8x64xbf16>
    %cst_13 = arith.constant dense<0.000000e+00> : vector<8x256xf32>
    %12 = tpu.matmul %11, %7, %cst_13 {dimension_numbers = #tpu.dot_dimension_numbers<[1], [0], [0], [1], [0, 0, 1, 1], [], []>} : vector<8x64xbf16>, vector<64x256xbf16>, vector<8x256xf32> -> vector<8x256xf32>
    %13 = arith.addf %12, %10 : vector<8x256xf32>
    %14 = vector.extract_strided_slice %13 {offsets = [0, 0], sizes = [8, 192], strides = [1, 1]} : vector<8x256xf32> to vector<8x192xf32>
    %15 = arith.negf %14 : vector<8x192xf32>
    %16 = math.exp %15 : vector<8x192xf32>
    %cst_14 = arith.constant 1.000000e+00 : f32
    %17 = vector.broadcast %cst_14 : f32 to vector<8x192xf32>
    %18 = arith.addf %17, %16 : vector<8x192xf32>
    %19 = arith.divf %17, %18 : vector<8x192xf32>
    %20 = vector.extract_strided_slice %13 {offsets = [0, 192], sizes = [8, 64], strides = [1, 1]} : vector<8x256xf32> to vector<8x64xf32>
    %21 = math.tanh %20 : vector<8x64xf32>
    %22 = vector.extract_strided_slice %19 {offsets = [0, 64], sizes = [8, 64], strides = [1, 1]} : vector<8x192xf32> to vector<8x64xf32>
    %23 = arith.mulf %22, %9 : vector<8x64xf32>
    %24 = vector.extract_strided_slice %19 {offsets = [0, 0], sizes = [8, 64], strides = [1, 1]} : vector<8x192xf32> to vector<8x64xf32>
    %25 = arith.mulf %24, %21 : vector<8x64xf32>
    %26 = arith.addf %23, %25 : vector<8x64xf32>
    %27 = vector.extract_strided_slice %19 {offsets = [0, 128], sizes = [8, 64], strides = [1, 1]} : vector<8x192xf32> to vector<8x64xf32>
    %28 = math.tanh %26 : vector<8x64xf32>
    %29 = arith.mulf %27, %28 : vector<8x64xf32>
    %30 = vector.extract_strided_slice %29 {offsets = [0, 0], sizes = [8, 32], strides = [1, 1]} : vector<8x64xf32> to vector<8x32xf32>
    %c0_15 = arith.constant 0 : index
    %c0_16 = arith.constant 0 : index
    %31 = vector.load %arg8[%c0_15, %c0_16] : memref<64x64xf32, #tpu.memory_space<vmem>>, vector<8x32xf32>
    tpu.vector_store %arg8[%c0_15, %c0_16], %30 {strides = array<i32>} : memref<64x64xf32, #tpu.memory_space<vmem>>, vector<8x32xf32>,
    %32 = vector.extract_strided_slice %29 {offsets = [0, 32], sizes = [8, 32], strides = [1, 1]} : vector<8x64xf32> to vector<8x32xf32>
    %c56 = arith.constant 56 : index
    %c32 = arith.constant 32 : index
    %33 = vector.load %arg8[%c56, %c32] : memref<64x64xf32, #tpu.memory_space<vmem>>, vector<8x32xf32>
    tpu.vector_store %arg8[%c56, %c32], %32 {strides = array<i32>} : memref<64x64xf32, #tpu.memory_space<vmem>>, vector<8x32xf32>,
    %c8 = arith.constant 8 : index
    %c0_17 = arith.constant 0 : index
    %34 = vector.load %arg7[%c8, %c0_17] : memref<64x256xf32, #tpu.memory_space<vmem>>, vector<8x256xf32>
    %35 = arith.truncf %29 : vector<8x64xf32> to vector<8x64xbf16>
    %cst_18 = arith.constant dense<0.000000e+00> : vector<8x256xf32>
    %36 = tpu.matmul %35, %7, %cst_18 {dimension_numbers = #tpu.dot_dimension_numbers<[1], [0], [0], [1], [0, 0, 1, 1], [], []>} : vector<8x64xbf16>, vector<64x256xbf16>, vector<8x256xf32> -> vector<8x256xf32>
    %37 = arith.addf %36, %34 : vector<8x256xf32>
    %38 = vector.extract_strided_slice %37 {offsets = [0, 0], sizes = [8, 192], strides = [1, 1]} : vector<8x256xf32> to vector<8x192xf32>
    %39 = arith.negf %38 : vector<8x192xf32>
    %40 = math.exp %39 : vector<8x192xf32>
    %cst_19 = arith.constant 1.000000e+00 : f32
    %41 = vector.broadcast %cst_19 : f32 to vector<8x192xf32>
    %42 = arith.addf %41, %40 : vector<8x192xf32>
    %43 = arith.divf %41, %42 : vector<8x192xf32>
    %44 = vector.extract_strided_slice %37 {offsets = [0, 192], sizes = [8, 64], strides = [1, 1]} : vector<8x256xf32> to vector<8x64xf32>
    %45 = math.tanh %44 : vector<8x64xf32>
    %46 = vector.extract_strided_slice %43 {offsets = [0, 64], sizes = [8, 64], strides = [1, 1]} : vector<8x192xf32> to vector<8x64xf32>
    %47 = arith.mulf %46, %26 : vector<8x64xf32>
    %48 = vector.extract_strided_slice %43 {offsets = [0, 0], sizes = [8, 64], strides = [1, 1]} : vector<8x192xf32> to vector<8x64xf32>
    %49 = arith.mulf %48, %45 : vector<8x64xf32>
    %50 = arith.addf %47, %49 : vector<8x64xf32>
    %51 = vector.extract_strided_slice %43 {offsets = [0, 128], sizes = [8, 64], strides = [1, 1]} : vector<8x192xf32> to vector<8x64xf32>
    %52 = math.tanh %50 : vector<8x64xf32>
    %53 = arith.mulf %51, %52 : vector<8x64xf32>
    %54 = vector.extract_strided_slice %53 {offsets = [0, 0], sizes = [8, 32], strides = [1, 1]} : vector<8x64xf32> to vector<8x32xf32>
    %c8_20 = arith.constant 8 : index
    %c0_21 = arith.constant 0 : index
    %55 = vector.load %arg8[%c8_20, %c0_21] : memref<64x64xf32, #tpu.memory_space<vmem>>, vector<8x32xf32>
    tpu.vector_store %arg8[%c8_20, %c0_21], %54 {strides = array<i32>} : memref<64x64xf32, #tpu.memory_space<vmem>>, vector<8x32xf32>,
    %56 = vector.extract_strided_slice %53 {offsets = [0, 32], sizes = [8, 32], strides = [1, 1]} : vector<8x64xf32> to vector<8x32xf32>
    %c48 = arith.constant 48 : index
    %c32_22 = arith.constant 32 : index
    %57 = vector.load %arg8[%c48, %c32_22] : memref<64x64xf32, #tpu.memory_space<vmem>>, vector<8x32xf32>
    tpu.vector_store %arg8[%c48, %c32_22], %56 {strides = array<i32>} : memref<64x64xf32, #tpu.memory_space<vmem>>, vector<8x32xf32>,
    %c16 = arith.constant 16 : index
    %c0_23 = arith.constant 0 : index
    %58 = vector.load %arg7[%c16, %c0_23] : memref<64x256xf32, #tpu.memory_space<vmem>>, vector<8x256xf32>
    %59 = arith.truncf %53 : vector<8x64xf32> to vector<8x64xbf16>
    %cst_24 = arith.constant dense<0.000000e+00> : vector<8x256xf32>
    %60 = tpu.matmul %59, %7, %cst_24 {dimension_numbers = #tpu.dot_dimension_numbers<[1], [0], [0], [1], [0, 0, 1, 1], [], []>} : vector<8x64xbf16>, vector<64x256xbf16>, vector<8x256xf32> -> vector<8x256xf32>
    %61 = arith.addf %60, %58 : vector<8x256xf32>
    %62 = vector.extract_strided_slice %61 {offsets = [0, 0], sizes = [8, 192], strides = [1, 1]} : vector<8x256xf32> to vector<8x192xf32>
    %63 = arith.negf %62 : vector<8x192xf32>
    %64 = math.exp %63 : vector<8x192xf32>
    %cst_25 = arith.constant 1.000000e+00 : f32
    %65 = vector.broadcast %cst_25 : f32 to vector<8x192xf32>
    %66 = arith.addf %65, %64 : vector<8x192xf32>
    %67 = arith.divf %65, %66 : vector<8x192xf32>
    %68 = vector.extract_strided_slice %61 {offsets = [0, 192], sizes = [8, 64], strides = [1, 1]} : vector<8x256xf32> to vector<8x64xf32>
    %69 = math.tanh %68 : vector<8x64xf32>
    %70 = vector.extract_strided_slice %67 {offsets = [0, 64], sizes = [8, 64], strides = [1, 1]} : vector<8x192xf32> to vector<8x64xf32>
    %71 = arith.mulf %70, %50 : vector<8x64xf32>
    %72 = vector.extract_strided_slice %67 {offsets = [0, 0], sizes = [8, 64], strides = [1, 1]} : vector<8x192xf32> to vector<8x64xf32>
    %73 = arith.mulf %72, %69 : vector<8x64xf32>
    %74 = arith.addf %71, %73 : vector<8x64xf32>
    %75 = vector.extract_strided_slice %67 {offsets = [0, 128], sizes = [8, 64], strides = [1, 1]} : vector<8x192xf32> to vector<8x64xf32>
    %76 = math.tanh %74 : vector<8x64xf32>
    %77 = arith.mulf %75, %76 : vector<8x64xf32>
    %78 = vector.extract_strided_slice %77 {offsets = [0, 0], sizes = [8, 32], strides = [1, 1]} : vector<8x64xf32> to vector<8x32xf32>
    %c16_26 = arith.constant 16 : index
    %c0_27 = arith.constant 0 : index
    %79 = vector.load %arg8[%c16_26, %c0_27] : memref<64x64xf32, #tpu.memory_space<vmem>>, vector<8x32xf32>
    tpu.vector_store %arg8[%c16_26, %c0_27], %78 {strides = array<i32>} : memref<64x64xf32, #tpu.memory_space<vmem>>, vector<8x32xf32>,
    %80 = vector.extract_strided_slice %77 {offsets = [0, 32], sizes = [8, 32], strides = [1, 1]} : vector<8x64xf32> to vector<8x32xf32>
    %c40 = arith.constant 40 : index
    %c32_28 = arith.constant 32 : index
    %81 = vector.load %arg8[%c40, %c32_28] : memref<64x64xf32, #tpu.memory_space<vmem>>, vector<8x32xf32>
    tpu.vector_store %arg8[%c40, %c32_28], %80 {strides = array<i32>} : memref<64x64xf32, #tpu.memory_space<vmem>>, vector<8x32xf32>,
    %c24 = arith.constant 24 : index
    %c0_29 = arith.constant 0 : index
    %82 = vector.load %arg7[%c24, %c0_29] : memref<64x256xf32, #tpu.memory_space<vmem>>, vector<8x256xf32>
    %83 = arith.truncf %77 : vector<8x64xf32> to vector<8x64xbf16>
    %cst_30 = arith.constant dense<0.000000e+00> : vector<8x256xf32>
    %84 = tpu.matmul %83, %7, %cst_30 {dimension_numbers = #tpu.dot_dimension_numbers<[1], [0], [0], [1], [0, 0, 1, 1], [], []>} : vector<8x64xbf16>, vector<64x256xbf16>, vector<8x256xf32> -> vector<8x256xf32>
    %85 = arith.addf %84, %82 : vector<8x256xf32>
    %86 = vector.extract_strided_slice %85 {offsets = [0, 0], sizes = [8, 192], strides = [1, 1]} : vector<8x256xf32> to vector<8x192xf32>
    %87 = arith.negf %86 : vector<8x192xf32>
    %88 = math.exp %87 : vector<8x192xf32>
    %cst_31 = arith.constant 1.000000e+00 : f32
    %89 = vector.broadcast %cst_31 : f32 to vector<8x192xf32>
    %90 = arith.addf %89, %88 : vector<8x192xf32>
    %91 = arith.divf %89, %90 : vector<8x192xf32>
    %92 = vector.extract_strided_slice %85 {offsets = [0, 192], sizes = [8, 64], strides = [1, 1]} : vector<8x256xf32> to vector<8x64xf32>
    %93 = math.tanh %92 : vector<8x64xf32>
    %94 = vector.extract_strided_slice %91 {offsets = [0, 64], sizes = [8, 64], strides = [1, 1]} : vector<8x192xf32> to vector<8x64xf32>
    %95 = arith.mulf %94, %74 : vector<8x64xf32>
    %96 = vector.extract_strided_slice %91 {offsets = [0, 0], sizes = [8, 64], strides = [1, 1]} : vector<8x192xf32> to vector<8x64xf32>
    %97 = arith.mulf %96, %93 : vector<8x64xf32>
    %98 = arith.addf %95, %97 : vector<8x64xf32>
    %99 = vector.extract_strided_slice %91 {offsets = [0, 128], sizes = [8, 64], strides = [1, 1]} : vector<8x192xf32> to vector<8x64xf32>
    %100 = math.tanh %98 : vector<8x64xf32>
    %101 = arith.mulf %99, %100 : vector<8x64xf32>
    %102 = vector.extract_strided_slice %101 {offsets = [0, 0], sizes = [8, 32], strides = [1, 1]} : vector<8x64xf32> to vector<8x32xf32>
    %c24_32 = arith.constant 24 : index
    %c0_33 = arith.constant 0 : index
    %103 = vector.load %arg8[%c24_32, %c0_33] : memref<64x64xf32, #tpu.memory_space<vmem>>, vector<8x32xf32>
    tpu.vector_store %arg8[%c24_32, %c0_33], %102 {strides = array<i32>} : memref<64x64xf32, #tpu.memory_space<vmem>>, vector<8x32xf32>,
    %104 = vector.extract_strided_slice %101 {offsets = [0, 32], sizes = [8, 32], strides = [1, 1]} : vector<8x64xf32> to vector<8x32xf32>
    %c32_34 = arith.constant 32 : index
    %c32_35 = arith.constant 32 : index
    %105 = vector.load %arg8[%c32_34, %c32_35] : memref<64x64xf32, #tpu.memory_space<vmem>>, vector<8x32xf32>
    tpu.vector_store %arg8[%c32_34, %c32_35], %104 {strides = array<i32>} : memref<64x64xf32, #tpu.memory_space<vmem>>, vector<8x32xf32>,
    %c32_36 = arith.constant 32 : index
    %c0_37 = arith.constant 0 : index
    %106 = vector.load %arg7[%c32_36, %c0_37] : memref<64x256xf32, #tpu.memory_space<vmem>>, vector<8x256xf32>
    %107 = arith.truncf %101 : vector<8x64xf32> to vector<8x64xbf16>
    %cst_38 = arith.constant dense<0.000000e+00> : vector<8x256xf32>
    %108 = tpu.matmul %107, %7, %cst_38 {dimension_numbers = #tpu.dot_dimension_numbers<[1], [0], [0], [1], [0, 0, 1, 1], [], []>} : vector<8x64xbf16>, vector<64x256xbf16>, vector<8x256xf32> -> vector<8x256xf32>
    %109 = arith.addf %108, %106 : vector<8x256xf32>
    %110 = vector.extract_strided_slice %109 {offsets = [0, 0], sizes = [8, 192], strides = [1, 1]} : vector<8x256xf32> to vector<8x192xf32>
    %111 = arith.negf %110 : vector<8x192xf32>
    %112 = math.exp %111 : vector<8x192xf32>
    %cst_39 = arith.constant 1.000000e+00 : f32
    %113 = vector.broadcast %cst_39 : f32 to vector<8x192xf32>
    %114 = arith.addf %113, %112 : vector<8x192xf32>
    %115 = arith.divf %113, %114 : vector<8x192xf32>
    %116 = vector.extract_strided_slice %109 {offsets = [0, 192], sizes = [8, 64], strides = [1, 1]} : vector<8x256xf32> to vector<8x64xf32>
    %117 = math.tanh %116 : vector<8x64xf32>
    %118 = vector.extract_strided_slice %115 {offsets = [0, 64], sizes = [8, 64], strides = [1, 1]} : vector<8x192xf32> to vector<8x64xf32>
    %119 = arith.mulf %118, %98 : vector<8x64xf32>
    %120 = vector.extract_strided_slice %115 {offsets = [0, 0], sizes = [8, 64], strides = [1, 1]} : vector<8x192xf32> to vector<8x64xf32>
    %121 = arith.mulf %120, %117 : vector<8x64xf32>
    %122 = arith.addf %119, %121 : vector<8x64xf32>
    %123 = vector.extract_strided_slice %115 {offsets = [0, 128], sizes = [8, 64], strides = [1, 1]} : vector<8x192xf32> to vector<8x64xf32>
    %124 = math.tanh %122 : vector<8x64xf32>
    %125 = arith.mulf %123, %124 : vector<8x64xf32>
    %126 = vector.extract_strided_slice %125 {offsets = [0, 0], sizes = [8, 32], strides = [1, 1]} : vector<8x64xf32> to vector<8x32xf32>
    %c32_40 = arith.constant 32 : index
    %c0_41 = arith.constant 0 : index
    %127 = vector.load %arg8[%c32_40, %c0_41] : memref<64x64xf32, #tpu.memory_space<vmem>>, vector<8x32xf32>
    tpu.vector_store %arg8[%c32_40, %c0_41], %126 {strides = array<i32>} : memref<64x64xf32, #tpu.memory_space<vmem>>, vector<8x32xf32>,
    %128 = vector.extract_strided_slice %125 {offsets = [0, 32], sizes = [8, 32], strides = [1, 1]} : vector<8x64xf32> to vector<8x32xf32>
    %c24_42 = arith.constant 24 : index
    %c32_43 = arith.constant 32 : index
    %129 = vector.load %arg8[%c24_42, %c32_43] : memref<64x64xf32, #tpu.memory_space<vmem>>, vector<8x32xf32>
    tpu.vector_store %arg8[%c24_42, %c32_43], %128 {strides = array<i32>} : memref<64x64xf32, #tpu.memory_space<vmem>>, vector<8x32xf32>,
    %c40_44 = arith.constant 40 : index
    %c0_45 = arith.constant 0 : index
    %130 = vector.load %arg7[%c40_44, %c0_45] : memref<64x256xf32, #tpu.memory_space<vmem>>, vector<8x256xf32>
    %131 = arith.truncf %125 : vector<8x64xf32> to vector<8x64xbf16>
    %cst_46 = arith.constant dense<0.000000e+00> : vector<8x256xf32>
    %132 = tpu.matmul %131, %7, %cst_46 {dimension_numbers = #tpu.dot_dimension_numbers<[1], [0], [0], [1], [0, 0, 1, 1], [], []>} : vector<8x64xbf16>, vector<64x256xbf16>, vector<8x256xf32> -> vector<8x256xf32>
    %133 = arith.addf %132, %130 : vector<8x256xf32>
    %134 = vector.extract_strided_slice %133 {offsets = [0, 0], sizes = [8, 192], strides = [1, 1]} : vector<8x256xf32> to vector<8x192xf32>
    %135 = arith.negf %134 : vector<8x192xf32>
    %136 = math.exp %135 : vector<8x192xf32>
    %cst_47 = arith.constant 1.000000e+00 : f32
    %137 = vector.broadcast %cst_47 : f32 to vector<8x192xf32>
    %138 = arith.addf %137, %136 : vector<8x192xf32>
    %139 = arith.divf %137, %138 : vector<8x192xf32>
    %140 = vector.extract_strided_slice %133 {offsets = [0, 192], sizes = [8, 64], strides = [1, 1]} : vector<8x256xf32> to vector<8x64xf32>
    %141 = math.tanh %140 : vector<8x64xf32>
    %142 = vector.extract_strided_slice %139 {offsets = [0, 64], sizes = [8, 64], strides = [1, 1]} : vector<8x192xf32> to vector<8x64xf32>
    %143 = arith.mulf %142, %122 : vector<8x64xf32>
    %144 = vector.extract_strided_slice %139 {offsets = [0, 0], sizes = [8, 64], strides = [1, 1]} : vector<8x192xf32> to vector<8x64xf32>
    %145 = arith.mulf %144, %141 : vector<8x64xf32>
    %146 = arith.addf %143, %145 : vector<8x64xf32>
    %147 = vector.extract_strided_slice %139 {offsets = [0, 128], sizes = [8, 64], strides = [1, 1]} : vector<8x192xf32> to vector<8x64xf32>
    %148 = math.tanh %146 : vector<8x64xf32>
    %149 = arith.mulf %147, %148 : vector<8x64xf32>
    %150 = vector.extract_strided_slice %149 {offsets = [0, 0], sizes = [8, 32], strides = [1, 1]} : vector<8x64xf32> to vector<8x32xf32>
    %c40_48 = arith.constant 40 : index
    %c0_49 = arith.constant 0 : index
    %151 = vector.load %arg8[%c40_48, %c0_49] : memref<64x64xf32, #tpu.memory_space<vmem>>, vector<8x32xf32>
    tpu.vector_store %arg8[%c40_48, %c0_49], %150 {strides = array<i32>} : memref<64x64xf32, #tpu.memory_space<vmem>>, vector<8x32xf32>,
    %152 = vector.extract_strided_slice %149 {offsets = [0, 32], sizes = [8, 32], strides = [1, 1]} : vector<8x64xf32> to vector<8x32xf32>
    %c16_50 = arith.constant 16 : index
    %c32_51 = arith.constant 32 : index
    %153 = vector.load %arg8[%c16_50, %c32_51] : memref<64x64xf32, #tpu.memory_space<vmem>>, vector<8x32xf32>
    tpu.vector_store %arg8[%c16_50, %c32_51], %152 {strides = array<i32>} : memref<64x64xf32, #tpu.memory_space<vmem>>, vector<8x32xf32>,
    %c48_52 = arith.constant 48 : index
    %c0_53 = arith.constant 0 : index
    %154 = vector.load %arg7[%c48_52, %c0_53] : memref<64x256xf32, #tpu.memory_space<vmem>>, vector<8x256xf32>
    %155 = arith.truncf %149 : vector<8x64xf32> to vector<8x64xbf16>
    %cst_54 = arith.constant dense<0.000000e+00> : vector<8x256xf32>
    %156 = tpu.matmul %155, %7, %cst_54 {dimension_numbers = #tpu.dot_dimension_numbers<[1], [0], [0], [1], [0, 0, 1, 1], [], []>} : vector<8x64xbf16>, vector<64x256xbf16>, vector<8x256xf32> -> vector<8x256xf32>
    %157 = arith.addf %156, %154 : vector<8x256xf32>
    %158 = vector.extract_strided_slice %157 {offsets = [0, 0], sizes = [8, 192], strides = [1, 1]} : vector<8x256xf32> to vector<8x192xf32>
    %159 = arith.negf %158 : vector<8x192xf32>
    %160 = math.exp %159 : vector<8x192xf32>
    %cst_55 = arith.constant 1.000000e+00 : f32
    %161 = vector.broadcast %cst_55 : f32 to vector<8x192xf32>
    %162 = arith.addf %161, %160 : vector<8x192xf32>
    %163 = arith.divf %161, %162 : vector<8x192xf32>
    %164 = vector.extract_strided_slice %157 {offsets = [0, 192], sizes = [8, 64], strides = [1, 1]} : vector<8x256xf32> to vector<8x64xf32>
    %165 = math.tanh %164 : vector<8x64xf32>
    %166 = vector.extract_strided_slice %163 {offsets = [0, 64], sizes = [8, 64], strides = [1, 1]} : vector<8x192xf32> to vector<8x64xf32>
    %167 = arith.mulf %166, %146 : vector<8x64xf32>
    %168 = vector.extract_strided_slice %163 {offsets = [0, 0], sizes = [8, 64], strides = [1, 1]} : vector<8x192xf32> to vector<8x64xf32>
    %169 = arith.mulf %168, %165 : vector<8x64xf32>
    %170 = arith.addf %167, %169 : vector<8x64xf32>
    %171 = vector.extract_strided_slice %163 {offsets = [0, 128], sizes = [8, 64], strides = [1, 1]} : vector<8x192xf32> to vector<8x64xf32>
    %172 = math.tanh %170 : vector<8x64xf32>
    %173 = arith.mulf %171, %172 : vector<8x64xf32>
    %174 = vector.extract_strided_slice %173 {offsets = [0, 0], sizes = [8, 32], strides = [1, 1]} : vector<8x64xf32> to vector<8x32xf32>
    %c48_56 = arith.constant 48 : index
    %c0_57 = arith.constant 0 : index
    %175 = vector.load %arg8[%c48_56, %c0_57] : memref<64x64xf32, #tpu.memory_space<vmem>>, vector<8x32xf32>
    tpu.vector_store %arg8[%c48_56, %c0_57], %174 {strides = array<i32>} : memref<64x64xf32, #tpu.memory_space<vmem>>, vector<8x32xf32>,
    %176 = vector.extract_strided_slice %173 {offsets = [0, 32], sizes = [8, 32], strides = [1, 1]} : vector<8x64xf32> to vector<8x32xf32>
    %c8_58 = arith.constant 8 : index
    %c32_59 = arith.constant 32 : index
    %177 = vector.load %arg8[%c8_58, %c32_59] : memref<64x64xf32, #tpu.memory_space<vmem>>, vector<8x32xf32>
    tpu.vector_store %arg8[%c8_58, %c32_59], %176 {strides = array<i32>} : memref<64x64xf32, #tpu.memory_space<vmem>>, vector<8x32xf32>,
    %c56_60 = arith.constant 56 : index
    %c0_61 = arith.constant 0 : index
    %178 = vector.load %arg7[%c56_60, %c0_61] : memref<64x256xf32, #tpu.memory_space<vmem>>, vector<8x256xf32>
    %179 = arith.truncf %173 : vector<8x64xf32> to vector<8x64xbf16>
    %cst_62 = arith.constant dense<0.000000e+00> : vector<8x256xf32>
    %180 = tpu.matmul %179, %7, %cst_62 {dimension_numbers = #tpu.dot_dimension_numbers<[1], [0], [0], [1], [0, 0, 1, 1], [], []>} : vector<8x64xbf16>, vector<64x256xbf16>, vector<8x256xf32> -> vector<8x256xf32>
    %181 = arith.addf %180, %178 : vector<8x256xf32>
    %182 = vector.extract_strided_slice %181 {offsets = [0, 0], sizes = [8, 192], strides = [1, 1]} : vector<8x256xf32> to vector<8x192xf32>
    %183 = arith.negf %182 : vector<8x192xf32>
    %184 = math.exp %183 : vector<8x192xf32>
    %cst_63 = arith.constant 1.000000e+00 : f32
    %185 = vector.broadcast %cst_63 : f32 to vector<8x192xf32>
    %186 = arith.addf %185, %184 : vector<8x192xf32>
    %187 = arith.divf %185, %186 : vector<8x192xf32>
    %188 = vector.extract_strided_slice %181 {offsets = [0, 192], sizes = [8, 64], strides = [1, 1]} : vector<8x256xf32> to vector<8x64xf32>
    %189 = math.tanh %188 : vector<8x64xf32>
    %190 = vector.extract_strided_slice %187 {offsets = [0, 64], sizes = [8, 64], strides = [1, 1]} : vector<8x192xf32> to vector<8x64xf32>
    %191 = arith.mulf %190, %170 : vector<8x64xf32>
    %192 = vector.extract_strided_slice %187 {offsets = [0, 0], sizes = [8, 64], strides = [1, 1]} : vector<8x192xf32> to vector<8x64xf32>
    %193 = arith.mulf %192, %189 : vector<8x64xf32>
    %194 = arith.addf %191, %193 : vector<8x64xf32>
    %195 = vector.extract_strided_slice %187 {offsets = [0, 128], sizes = [8, 64], strides = [1, 1]} : vector<8x192xf32> to vector<8x64xf32>
    %196 = math.tanh %194 : vector<8x64xf32>
    %197 = arith.mulf %195, %196 : vector<8x64xf32>
    %198 = vector.extract_strided_slice %197 {offsets = [0, 0], sizes = [8, 32], strides = [1, 1]} : vector<8x64xf32> to vector<8x32xf32>
    %c56_64 = arith.constant 56 : index
    %c0_65 = arith.constant 0 : index
    %199 = vector.load %arg8[%c56_64, %c0_65] : memref<64x64xf32, #tpu.memory_space<vmem>>, vector<8x32xf32>
    tpu.vector_store %arg8[%c56_64, %c0_65], %198 {strides = array<i32>} : memref<64x64xf32, #tpu.memory_space<vmem>>, vector<8x32xf32>,
    %200 = vector.extract_strided_slice %197 {offsets = [0, 32], sizes = [8, 32], strides = [1, 1]} : vector<8x64xf32> to vector<8x32xf32>
    %c0_66 = arith.constant 0 : index
    %c32_67 = arith.constant 32 : index
    %201 = vector.load %arg8[%c0_66, %c32_67] : memref<64x64xf32, #tpu.memory_space<vmem>>, vector<8x32xf32>
    tpu.vector_store %arg8[%c0_66, %c32_67], %200 {strides = array<i32>} : memref<64x64xf32, #tpu.memory_space<vmem>>, vector<8x32xf32>,
    %c0_68 = arith.constant 0 : index
    %c0_69 = arith.constant 0 : index
    %202 = vector.load %arg8[%c0_68, %c0_69] : memref<64x64xf32, #tpu.memory_space<vmem>>, vector<64x64xf32>
    %203 = arith.truncf %202 : vector<64x64xf32> to vector<64x64xbf16>
    %c0_70 = arith.constant 0 : index
    %c0_71 = arith.constant 0 : index
    %204 = vector.load %arg4[%c0_70, %c0_71] : memref<64x128xbf16, #tpu.memory_space<vmem>>, vector<64x128xbf16>
    %cst_72 = arith.constant dense<0.000000e+00> : vector<64x128xf32>
    %205 = tpu.matmul %203, %204, %cst_72 {dimension_numbers = #tpu.dot_dimension_numbers<[1], [0], [0], [1], [0, 0, 1, 1], [], []>} : vector<64x64xbf16>, vector<64x128xbf16>, vector<64x128xf32> -> vector<64x128xf32>
    %c0_73 = arith.constant 0 : index
    %c0_74 = arith.constant 0 : index
    %206 = vector.load %arg5[%c0_73, %c0_74] : memref<1x128xf32, #tpu.memory_space<vmem>>, vector<1x128xf32>
    %207 = vector.broadcast %206 : vector<1x128xf32> to vector<64x128xf32>
    %208 = arith.addf %205, %207 : vector<64x128xf32>
    %c0_75 = arith.constant 0 : index
    %c0_76 = arith.constant 0 : index
    %209 = vector.load %arg6[%c0_75, %c0_76] : memref<64x128xf32, #tpu.memory_space<vmem>>, vector<64x128xf32>
    tpu.vector_store %arg6[%c0_75, %c0_76], %208 {strides = array<i32>} : memref<64x128xf32, #tpu.memory_space<vmem>>, vector<64x128xf32>,
    return
  }
}

</mosaic_0001>

<bundles_post_ra>
// kernel: bilstm_forward.1
= control target key start
LH: loop header
LB: loop body
LE: loop exit
PB: predicated region body
PF: predicated region fallthrough
CT: control target
= control target key end

     0   :  { %v1253_v1 = vmov 0   ;;  %vm112_vm0 = vcmask 523264   ;;  %v42_v20 = vlaneseq  ;;  %vm338_vm1 = vcmask 261120   ;;  %s1593_s1 = inlined_call_operand.vmem [shape: bf16[64,256], index: 1, kind: input, shape index: {}]   ;;  %s1594_s0 = inlined_call_operand.vmem [shape: bf16[64,64], index: 0, kind: input, shape index: {}]   ;;  %s1595_s2 = inlined_call_operand.vmem [shape: bf16[64,256], index: 2, kind: input, shape index: {}]   ;;  %s1596_s3 = inlined_call_operand.vmem [shape: f32[1,256], index: 3, kind: input, shape index: {}]   ;;  %s1597_s4 = inlined_call_operand.vmem [shape: bf16[64,128], index: 4, kind: input, shape index: {}]   ;;  %s1598_s5 = inlined_call_operand.vmem [shape: f32[1,128], index: 5, kind: input, shape index: {}]   ;;  %s1599_s6 = inlined_call_operand.vmem [shape: f32[64,128], index: 6, kind: output, shape index: {}]  }
   0x1   :  { %v1125_v0 = vld [vmem:[%s1593_s1 + $0x4] ss:$8 sps:$4 sm:$0xff]   ;;  %177 = vmatprep.mubr.bf16.mxu1 %v1253_v1  ;;  %157 = vmatprep.mubr.bf16.mxu0 %v1253_v1  ;;  %v1127_v2 = vld [vmem:[%s1593_s1] ss:$8 sps:$4 sm:$0xff]   ;;  %v1128_v3 = vld [vmem:[%s1593_s1 + $0x14] ss:$8 sps:$4 sm:$0xff]  }
   0x2   :  { %1115 = vmatprep.subr.bf16.mxu1 %v1125_v0  ;;  %125 = vmatprep.subr.bf16.mxu0 %v1125_v0  ;;  %v1130_v4 = vld [vmem:[%s1593_s1 + $0x10] ss:$8 sps:$4 sm:$0xff]   ;;  %v1131_v5 = vld [vmem:[%s1593_s1 + $0x24] ss:$8 sps:$4 sm:$0xff]   ;;  %v1133_v6 = vld [vmem:[%s1593_s1 + $0x20] ss:$8 sps:$4 sm:$0xff]  }
   0x3   :  { %1119 = vmatpush1.bf16.msra.mxu1 %v1127_v2  ;;  %126 = vmatpush1.bf16.msra.mxu0 %v1127_v2  ;;  %v1134_v7 = vld [vmem:[%s1593_s1 + $0x34] ss:$8 sps:$4 sm:$0xff]   ;;  %v1136_v8 = vld [vmem:[%s1593_s1 + $0x30] ss:$8 sps:$4 sm:$0xff]   ;;  %v1319_v9 = vld [vmem:[%s1595_s2 + $0x4] ss:$8 sps:$4 sm:$0xff]  }
   0x4   :  { %1116 = vmatprep.subr.bf16.mxu1 %v1128_v3  ;;  %127 = vmatprep.subr.bf16.mxu0 %v1128_v3  ;;  %v1137_v10 = vld [vmem:[%s1594_s0 + $0x10] sm:$0xff]   ;;  %v1148_v11 = vld [vmem:[%s1594_s0] sm:$0xff]   ;;  %v1144_v16 = vld [vmem:[%s1594_s0 + $0x18] sm:$0xff]   ;;  %v43_v27 = vshrl.u32 %v42_v20, 7  ;;  %vm340_vm2 = vcmask 523520  }
   0x5   :  { %v1330_v12 = vld [vmem:[%s1595_s2] ss:$8 sps:$4 sm:$0xff]   ;;  %v1336_v13 = vld [vmem:[%s1595_s2 + $0x14] ss:$8 sps:$4 sm:$0xff]   ;;  %v1345_v14 = vld [vmem:[%s1595_s2 + $0x10] ss:$8 sps:$4 sm:$0xff]  }
   0x6   :  { %v1352_v15 = vld [vmem:[%s1595_s2 + $0x24] ss:$8 sps:$4 sm:$0xff]   ;;  %v1364_v17 = vld [vmem:[%s1595_s2 + $0x20] ss:$8 sps:$4 sm:$0xff]   ;;  %v1370_v18 = vld [vmem:[%s1595_s2 + $0x34] ss:$8 sps:$4 sm:$0xff]  }
   0x7   :  { %1120 = vmatpush1.bf16.msra.mxu1 %v1130_v4  ;;  %128 = vmatpush1.bf16.msra.mxu0 %v1130_v4  ;;  %v1379_v19 = vld [vmem:[%s1595_s2 + $0x30] ss:$8 sps:$4 sm:$0xff]   ;;  %v44_v30 = vsub.s32 0, %v43_v27  ;;  %v40_v31 = vld [vmem:[%s1596_s3] sm:$0x3]  ;;  %v48_v32 = vsub.s32 1, %v43_v27 }
   0x8   :  { %1117 = vmatprep.subr.bf16.mxu1 %v1131_v5  ;;  %129 = vmatprep.subr.bf16.mxu0 %v1131_v5  ;;  %s1254_s3 = smov 64  }
   0x9   :  { %v1418_v36 = vrot.slane %v40_v31, %v44_v30  ;;  %v1422_v38 = vrot.slane %v40_v31, %v48_v32 }
   0xb   :  { %1121 = vmatpush1.bf16.msra.mxu1 %v1133_v6  ;;  %130 = vmatpush1.bf16.msra.mxu0 %v1133_v6 }
   0xc   :  { %1118 = vmatprep.subr.bf16.mxu1 %v1134_v7  ;;  %131 = vmatprep.subr.bf16.mxu0 %v1134_v7 }
   0xf   :  { %1122 = vmatpush1.bf16.msra.mxu1 %v1136_v8  ;;  %132 = vmatpush1.bf16.msra.mxu0 %v1136_v8 }
  0x10   :  { %267 = vmatprep.subr.bf16.mxu1 %v1319_v9  ;;  %427 = vmatprep.subr.bf16.mxu0 %v1319_v9 }
  0x12   :  { %1049 = vmatmul.mubr.msk.bf16.vlgmr.msra.gmra.mrb[0].mxu1 %vm112_vm0, %v1137_v10  ;;  %1047 = vmatmul.mubr.msk.bf16.vlgmr.msra.gmra.mrb[0].mxu0 %vm112_vm0, %v1148_v11 }
  0x13   :  { %268 = vmatpush1.bf16.msra.mxu1 %v1330_v12  ;;  %187 = vmatprep.mubr.bf16.mxu1 %v1253_v1 }
  0x14   :  { %269 = vmatprep.subr.bf16.mxu1 %v1336_v13  ;;  %428 = vmatpush1.bf16.msra.mxu0 %v1330_v12 }
  0x15   :  { %429 = vmatprep.subr.bf16.mxu0 %v1336_v13  ;;  %167 = vmatprep.mubr.bf16.mxu0 %v1253_v1 }
  0x17   :  { %270 = vmatpush1.bf16.msra.mxu1 %v1345_v14 }
  0x18   :  { %271 = vmatprep.subr.bf16.mxu1 %v1352_v15  ;;  %430 = vmatpush1.bf16.msra.mxu0 %v1345_v14 }
  0x19   :  { %431 = vmatprep.subr.bf16.mxu0 %v1352_v15 }
  0x1a   :  { %1050 = vmatmul.mubr.msk.bf16.gmra.mrb[4].mxu1 %vm112_vm0, %v1144_v16 }
  0x1b   :  { %272 = vmatpush1.bf16.msra.mxu1 %v1364_v17  ;;  %299 = vmatprep.mubr.bf16.mxu1 %v1253_v1 }
  0x1c   :  { %273 = vmatprep.subr.bf16.mxu1 %v1370_v18  ;;  %432 = vmatpush1.bf16.msra.mxu0 %v1364_v17 }
  0x1d   :  { %433 = vmatprep.subr.bf16.mxu0 %v1370_v18 }
  0x1f   :  { %274 = vmatpush1.bf16.msra.mxu1 %v1379_v19 }
  0x20   :  { %348 = vmatprep.subr.bf16.mxu1 %v1319_v9  ;;  %434 = vmatpush1.bf16.msra.mxu0 %v1379_v19 }
  0x21   :  { %585 = vmatprep.subr.bf16.mxu0 %v1319_v9 }
  0x22   :  { %300 = vmatmul.mubr.bf16.vlgmr.msra.gmra.mrb[8].mxu1 %v1253_v1 }
  0x23   :  { %349 = vmatpush1.bf16.msra.mxu1 %v1330_v12  ;;  %380 = vmatprep.mubr.bf16.mxu1 %v1253_v1 }
  0x24   :  { %350 = vmatprep.subr.bf16.mxu1 %v1336_v13 }
  0x27   :  { %351 = vmatpush1.bf16.msra.mxu1 %v1345_v14 }
  0x28   :  { %352 = vmatprep.subr.bf16.mxu1 %v1352_v15 }
  0x2b   :  { %353 = vmatpush1.bf16.msra.mxu1 %v1364_v17 }
  0x2c   :  { %354 = vmatprep.subr.bf16.mxu1 %v1370_v18 }
  0x2f   :  { %355 = vmatpush1.bf16.msra.mxu1 %v1379_v19 }
  0x30   :  { %506 = vmatprep.subr.bf16.mxu1 %v1319_v9 }
  0xe5   :  { %v1399_v21 = vpop.f32.mrb[0].mxu1  ;;  %v159_v22 = vpop.f32.mrb[0].mxu0 }
  0xe6   :  { %v1401_v23 = vpop.f32.mrb[1].mxu1  ;;  %v161_v24 = vpop.f32.mrb[1].mxu0  ;;  %v160_v39 = vadd.f32 %v159_v22, %v1418_v36 }
  0xe7   :  { %v1403_v25 = vpop.f32.mrb[2].mxu1  ;;  %v1405_v26 = vpop.f32.mrb[2].mxu0  ;;  %v162_v40 = vadd.f32 %v161_v24, %v1422_v38 }
  0xe8   :  { %v1407_v28 = vpop.f32.mrb[3].mxu1  ;;  %v165_v29 = vpop.f32.mrb[3].mxu0  ;;  %v164_v2 = vadd.f32 %v1405_v26, %v1418_v36 }
  0xe9   :  { %v166_v3 = vadd.f32 %v165_v29, %v1422_v38  ;;  %v1152_v29 = vld [vmem:[%s1594_s0 + $0x8] sm:$0xff]  }
  0xea   :  { %1048 = vmatmul.mubr.msk.bf16.gmra.mrb[4].mxu0 %vm112_vm0, %v1152_v29 }
  0xeb   :  { %459 = vmatprep.mubr.bf16.mxu0 %v1253_v1 }
  0xed   :  { %v1412_v33 = vpop.f32.mrb[4].mxu1 }
  0xee   :  { %v1414_v34 = vpop.f32.mrb[5].mxu1 }
  0xef   :  { %v1416_v35 = vpop.f32.mrb[6].mxu1 }
  0xf0   :  { %v1420_v37 = vpop.f32.mrb[7].mxu1 }
  0xf5   :  { %v301_v41 = vpop.f32.mrb[8].mxu1 }
  0xf6   :  { %v302_v42 = vadd.f32 %v301_v41, %v160_v39  ;;  %v303_v43 = vpop.f32.mrb[9].mxu1 }
  0xf7   :  { %v304_v44 = vadd.f32 %v303_v43, %v162_v40  ;;  %v305_v45 = vpop.f32.mrb[10].mxu1 }
  0xf8   :  { %v306_v46 = vpop.f32.mrb[11].mxu1  ;;  %v1059_v48 = vmul.f32 -1.442695, %v302_v42 }
  0xf9   :  { %1157 = vtanh.f32 %v304_v44  ;;  %v1060_v58 = vmul.f32 -1.442695, %v304_v44 }
  0xfa   :  { %1159 = vpow2.f32 %v1059_v48 }
 0x103   :  { %v1158_v47 = vpop.eup %1157 }
 0x104   :  { %323 = vrot.lane.b32.xlu0 %v1158_v47, %s1254_s3  ;;  %v1160_v49 = vpop.eup %1159 }
 0x105   :  { %v314_v50 = vadd.f32 1.0, %v1160_v49 }
 0x107   :  { %1161 = vrcp.f32 %v314_v50 }
 0x111   :  { %v1162_v51 = vpop.eup %1161 }
 0x112   :  { %v321_v54 = vmul.f32 0.0, %v1162_v51 }
 0x176   :  { %v324_v52 = vpop.permute.xlu0 %323 }
 0x177   :  { %v326_v53 = vmul.f32 %v1162_v51, %v324_v52 }
 0x179   :  { %328 = vrot.lane.b32.xlu0 %v326_v53, %s1254_s3 }
 0x1bd   :  { %v169_v41 = vpop.f32.mrb[4].mxu0 }
 0x1be   :  { %v171_v42 = vpop.f32.mrb[5].mxu0  ;;  %v170_v51 = vadd.f32 %v169_v41, %v1418_v36 }
 0x1bf   :  { %v1452_v43 = vpop.f32.mrb[6].mxu0  ;;  %v172_v52 = vadd.f32 %v171_v42, %v1422_v38 }
 0x1c0   :  { %v1454_v44 = vpop.f32.mrb[7].mxu0 }
 0x1eb   :  { %v329_v55 = vpop.permute.xlu0 %328 }
 0x1ec   :  { %v331_v56 = vadd.f32 %v329_v55, %v321_v54 }
 0x1ee   :  { %1163 = vtanh.f32 %v331_v56 }
 0x1ef   :  { %1165 = vpow2.f32 %v1060_v58 }
 0x1f8   :  { %v1164_v57 = vpop.eup %1163 }
 0x1f9   :  { %334 = vrot.lane.b32.xlu1 %v1164_v57, %s1254_s3  ;;  %v1166_v59 = vpop.eup %1165 }
 0x1fa   :  { %v315_v60 = vadd.f32 1.0, %v1166_v59 }
 0x1fc   :  { %1167 = vrcp.f32 %v315_v60 }
 0x206   :  { %v1168_v61 = vpop.eup %1167 }
 0x26b   :  { %v335_v62 = vpop.permute.xlu1 %334 }
 0x26c   :  { %v337_v63 = vmul.f32 %v1168_v61, %v335_v62 }
 0x26e   :  { %339 = vst.msk [vmem:[#allocation3] sm:$0xff] %vm338_vm1, %v337_v63  ;;  %v344_v0 = vpack.c.bf16 %v337_v63, %v337_v63 }
 0x26f   :  { %341 = vst.msk [vmem:[#allocation3 + $0x38] sm:$0xff] %vm340_vm2, %v337_v63 }
 0x270   :  { %1061 = vmatmul.mubr.msk.bf16.vlgmr.msra.gmra.mrb[12].mxu1 %vm112_vm0, %v344_v0 }
 0x271   :  { %507 = vmatpush1.bf16.msra.mxu1 %v1330_v12  ;;  %538 = vmatprep.mubr.bf16.mxu1 %v1253_v1 }
 0x272   :  { %508 = vmatprep.subr.bf16.mxu1 %v1336_v13 }
 0x275   :  { %509 = vmatpush1.bf16.msra.mxu1 %v1345_v14 }
 0x276   :  { %510 = vmatprep.subr.bf16.mxu1 %v1352_v15 }
 0x279   :  { %511 = vmatpush1.bf16.msra.mxu1 %v1364_v17 }
 0x27a   :  { %512 = vmatprep.subr.bf16.mxu1 %v1370_v18 }
 0x27d   :  { %513 = vmatpush1.bf16.msra.mxu1 %v1379_v19 }
 0x27e   :  { %664 = vmatprep.subr.bf16.mxu1 %v1319_v9 }
 0x343   :  { %v382_v4 = vpop.f32.mrb[12].mxu1 }
 0x344   :  { %v383_v5 = vadd.f32 %v382_v4, %v164_v2  ;;  %v384_v6 = vpop.f32.mrb[13].mxu1 }
 0x345   :  { %v385_v7 = vadd.f32 %v384_v6, %v166_v3  ;;  %v386_v8 = vpop.f32.mrb[14].mxu1 }
 0x346   :  { %v387_v10 = vpop.f32.mrb[15].mxu1  ;;  %v1062_v16 = vmul.f32 -1.442695, %v383_v5 }
 0x347   :  { %1169 = vtanh.f32 %v385_v7  ;;  %v1063_v40 = vmul.f32 -1.442695, %v385_v7 }
 0x348   :  { %1171 = vpow2.f32 %v1062_v16 }
 0x351   :  { %v1170_v11 = vpop.eup %1169 }
 0x352   :  { %404 = vrot.lane.b32.xlu1 %v1170_v11, %s1254_s3  ;;  %v1172_v20 = vpop.eup %1171 }
 0x353   :  { %v395_v22 = vadd.f32 1.0, %v1172_v20 }
 0x355   :  { %1173 = vrcp.f32 %v395_v22 }
 0x35f   :  { %v1174_v24 = vpop.eup %1173 }
 0x360   :  { %v402_v30 = vmul.f32 %v1174_v24, %v331_v56 }
 0x3c4   :  { %v405_v27 = vpop.permute.xlu1 %404 }
 0x3c5   :  { %v407_v26 = vmul.f32 %v1174_v24, %v405_v27  ;;  %v174_v24 = vadd.f32 %v1452_v43, %v1418_v36  ;;  %v176_v27 = vadd.f32 %v1454_v44, %v1422_v38 }
 0x3c7   :  { %409 = vrot.lane.b32.xlu0 %v407_v26, %s1254_s3 }
 0x439   :  { %v410_v31 = vpop.permute.xlu0 %409 }
 0x43a   :  { %v412_v32 = vadd.f32 %v410_v31, %v402_v30 }
 0x43c   :  { %1175 = vtanh.f32 %v412_v32 }
 0x43d   :  { %1177 = vpow2.f32 %v1063_v40 }
 0x446   :  { %v1176_v39 = vpop.eup %1175 }
 0x447   :  { %415 = vrot.lane.b32.xlu1 %v1176_v39, %s1254_s3  ;;  %v1178_v45 = vpop.eup %1177 }
 0x448   :  { %v396_v46 = vadd.f32 1.0, %v1178_v45 }
 0x44a   :  { %1179 = vrcp.f32 %v396_v46 }
 0x454   :  { %v1180_v47 = vpop.eup %1179 }
 0x4b9   :  { %v416_v48 = vpop.permute.xlu1 %415 }
 0x4ba   :  { %v418_v49 = vmul.f32 %v1180_v47, %v416_v48 }
 0x4bc   :  { %419 = vst.msk [vmem:[#allocation3 + $0x8] sm:$0xff] %vm338_vm1, %v418_v49  ;;  %v423_v50 = vpack.c.bf16 %v418_v49, %v418_v49 }
 0x4bd   :  { %420 = vst.msk [vmem:[#allocation3 + $0x30] sm:$0xff] %vm340_vm2, %v418_v49 }
 0x4be   :  { %1064 = vmatmul.mubr.msk.bf16.vlgmr.msra.gmra.mrb[8].mxu0 %vm112_vm0, %v423_v50 }
 0x4bf   :  { %586 = vmatpush1.bf16.msra.mxu0 %v1330_v12  ;;  %617 = vmatprep.mubr.bf16.mxu0 %v1253_v1 }
 0x4c0   :  { %587 = vmatprep.subr.bf16.mxu0 %v1336_v13 }
 0x4c3   :  { %588 = vmatpush1.bf16.msra.mxu0 %v1345_v14 }
 0x4c4   :  { %589 = vmatprep.subr.bf16.mxu0 %v1352_v15 }
 0x4c7   :  { %590 = vmatpush1.bf16.msra.mxu0 %v1364_v17 }
 0x4c8   :  { %591 = vmatprep.subr.bf16.mxu0 %v1370_v18 }
 0x4cb   :  { %592 = vmatpush1.bf16.msra.mxu0 %v1379_v19 }
 0x4cc   :  { %743 = vmatprep.subr.bf16.mxu0 %v1319_v9 }
 0x591   :  { %v461_v53 = vpop.f32.mrb[8].mxu0 }
 0x592   :  { %v462_v54 = vadd.f32 %v461_v53, %v170_v51  ;;  %v463_v55 = vpop.f32.mrb[9].mxu0 }
 0x593   :  { %v464_v56 = vadd.f32 %v463_v55, %v172_v52  ;;  %v465_v57 = vpop.f32.mrb[10].mxu0 }
 0x594   :  { %v466_v58 = vpop.f32.mrb[11].mxu0  ;;  %v1065_v60 = vmul.f32 -1.442695, %v462_v54  ;;  %v180_v57 = vadd.f32 %v1399_v21, %v1418_v36 }
 0x595   :  { %1181 = vtanh.f32 %v464_v56  ;;  %v1066_v7 = vmul.f32 -1.442695, %v464_v56  ;;  %v182_v58 = vadd.f32 %v1401_v23, %v1422_v38 }
 0x596   :  { %1183 = vpow2.f32 %v1065_v60 }
 0x59f   :  { %v1182_v59 = vpop.eup %1181 }
 0x5a0   :  { %483 = vrot.lane.b32.xlu0 %v1182_v59, %s1254_s3  ;;  %v1184_v61 = vpop.eup %1183 }
 0x5a1   :  { %v474_v62 = vadd.f32 1.0, %v1184_v61 }
 0x5a3   :  { %1185 = vrcp.f32 %v474_v62 }
 0x5ad   :  { %v1186_v63 = vpop.eup %1185 }
 0x5ae   :  { %v481_v3 = vmul.f32 %v1186_v63, %v412_v32 }
 0x612   :  { %v484_v0 = vpop.permute.xlu0 %483 }
 0x613   :  { %v486_v2 = vmul.f32 %v1186_v63, %v484_v0 }
 0x615   :  { %488 = vrot.lane.b32.xlu1 %v486_v2, %s1254_s3 }
 0x687   :  { %v489_v4 = vpop.permute.xlu1 %488 }
 0x688   :  { %v491_v5 = vadd.f32 %v489_v4, %v481_v3 }
 0x68a   :  { %1187 = vtanh.f32 %v491_v5 }
 0x68b   :  { %1189 = vpow2.f32 %v1066_v7 }
 0x694   :  { %v1188_v6 = vpop.eup %1187 }
 0x695   :  { %494 = vrot.lane.b32.xlu0 %v1188_v6, %s1254_s3  ;;  %v1190_v8 = vpop.eup %1189 }
 0x696   :  { %v475_v10 = vadd.f32 1.0, %v1190_v8 }
 0x698   :  { %1191 = vrcp.f32 %v475_v10 }
 0x6a2   :  { %v1192_v11 = vpop.eup %1191 }
 0x707   :  { %v495_v16 = vpop.permute.xlu0 %494 }
 0x708   :  { %v497_v20 = vmul.f32 %v1192_v11, %v495_v16 }
 0x70a   :  { %498 = vst.msk [vmem:[#allocation3 + $0x10] sm:$0xff] %vm338_vm1, %v497_v20  ;;  %v502_v22 = vpack.c.bf16 %v497_v20, %v497_v20 }
 0x70b   :  { %499 = vst.msk [vmem:[#allocation3 + $0x28] sm:$0xff] %vm340_vm2, %v497_v20 }
 0x70c   :  { %1067 = vmatmul.mubr.msk.bf16.vlgmr.msra.gmra.mrb[16].mxu1 %vm112_vm0, %v502_v22 }
 0x70d   :  { %665 = vmatpush1.bf16.msra.mxu1 %v1330_v12  ;;  %696 = vmatprep.mubr.bf16.mxu1 %v1253_v1 }
 0x70e   :  { %666 = vmatprep.subr.bf16.mxu1 %v1336_v13 }
 0x711   :  { %667 = vmatpush1.bf16.msra.mxu1 %v1345_v14 }
 0x712   :  { %668 = vmatprep.subr.bf16.mxu1 %v1352_v15 }
 0x715   :  { %669 = vmatpush1.bf16.msra.mxu1 %v1364_v17 }
 0x716   :  { %670 = vmatprep.subr.bf16.mxu1 %v1370_v18 }
 0x719   :  { %671 = vmatpush1.bf16.msra.mxu1 %v1379_v19 }
 0x71a   :  { %822 = vmatprep.subr.bf16.mxu1 %v1319_v9 }
 0x7df   :  { %v540_v26 = vpop.f32.mrb[16].mxu1 }
 0x7e0   :  { %v541_v29 = vadd.f32 %v540_v26, %v174_v24  ;;  %v542_v30 = vpop.f32.mrb[17].mxu1 }
 0x7e1   :  { %v543_v31 = vadd.f32 %v542_v30, %v176_v27  ;;  %v544_v32 = vpop.f32.mrb[18].mxu1  ;;  %v184_v30 = vadd.f32 %v1403_v25, %v1418_v36 }
 0x7e2   :  { %v545_v39 = vpop.f32.mrb[19].mxu1  ;;  %v1068_v41 = vmul.f32 -1.442695, %v541_v29 }
 0x7e3   :  { %1193 = vtanh.f32 %v543_v31  ;;  %v1069_v50 = vmul.f32 -1.442695, %v543_v31 }
 0x7e4   :  { %1195 = vpow2.f32 %v1068_v41 }
 0x7ed   :  { %v1194_v40 = vpop.eup %1193 }
 0x7ee   :  { %562 = vrot.lane.b32.xlu1 %v1194_v40, %s1254_s3  ;;  %v1196_v42 = vpop.eup %1195 }
 0x7ef   :  { %v553_v9 = vadd.f32 1.0, %v1196_v42 }
 0x7f1   :  { %1197 = vrcp.f32 %v553_v9 }
 0x7fb   :  { %v1198_v45 = vpop.eup %1197 }
 0x7fc   :  { %v560_v44 = vmul.f32 %v1198_v45, %v491_v5 }
 0x860   :  { %v563_v43 = vpop.permute.xlu1 %562 }
 0x861   :  { %v565_v46 = vmul.f32 %v1198_v45, %v563_v43 }
 0x863   :  { %567 = vrot.lane.b32.xlu0 %v565_v46, %s1254_s3 }
 0x8d5   :  { %v568_v47 = vpop.permute.xlu0 %567 }
 0x8d6   :  { %v570_v48 = vadd.f32 %v568_v47, %v560_v44 }
 0x8d8   :  { %1199 = vtanh.f32 %v570_v48 }
 0x8d9   :  { %1201 = vpow2.f32 %v1069_v50 }
 0x8e2   :  { %v1200_v49 = vpop.eup %1199 }
 0x8e3   :  { %573 = vrot.lane.b32.xlu1 %v1200_v49, %s1254_s3  ;;  %v1202_v51 = vpop.eup %1201 }
 0x8e4   :  { %v554_v52 = vadd.f32 1.0, %v1202_v51  ;;  %v190_v51 = vadd.f32 %v1412_v33, %v1418_v36 }
 0x8e6   :  { %1203 = vrcp.f32 %v554_v52  ;;  %v192_v52 = vadd.f32 %v1414_v34, %v1422_v38 }
 0x8f0   :  { %v1204_v53 = vpop.eup %1203 }
 0x955   :  { %v574_v54 = vpop.permute.xlu1 %573 }
 0x956   :  { %v576_v55 = vmul.f32 %v1204_v53, %v574_v54 }
 0x958   :  { %577 = vst.msk [vmem:[#allocation3 + $0x18] sm:$0xff] %vm338_vm1, %v576_v55  ;;  %v581_v56 = vpack.c.bf16 %v576_v55, %v576_v55 }
 0x959   :  { %578 = vst.msk [vmem:[#allocation3 + $0x20] sm:$0xff] %vm340_vm2, %v576_v55 }
 0x95a   :  { %1070 = vmatmul.mubr.msk.bf16.vlgmr.msra.gmra.mrb[12].mxu0 %vm112_vm0, %v581_v56 }
 0x95b   :  { %744 = vmatpush1.bf16.msra.mxu0 %v1330_v12  ;;  %775 = vmatprep.mubr.bf16.mxu0 %v1253_v1 }
 0x95c   :  { %745 = vmatprep.subr.bf16.mxu0 %v1336_v13 }
 0x95f   :  { %746 = vmatpush1.bf16.msra.mxu0 %v1345_v14 }
 0x960   :  { %747 = vmatprep.subr.bf16.mxu0 %v1352_v15 }
 0x963   :  { %748 = vmatpush1.bf16.msra.mxu0 %v1364_v17 }
 0x964   :  { %749 = vmatprep.subr.bf16.mxu0 %v1370_v18 }
 0x967   :  { %750 = vmatpush1.bf16.msra.mxu0 %v1379_v19 }
 0xa2d   :  { %v619_v59 = vpop.f32.mrb[12].mxu0 }
 0xa2e   :  { %v620_v60 = vadd.f32 %v619_v59, %v180_v57  ;;  %v621_v61 = vpop.f32.mrb[13].mxu0 }
 0xa2f   :  { %v622_v62 = vadd.f32 %v621_v61, %v182_v58  ;;  %v623_v63 = vpop.f32.mrb[14].mxu0 }
 0xa30   :  { %v624_v0 = vpop.f32.mrb[15].mxu0  ;;  %v1071_v3 = vmul.f32 -1.442695, %v620_v60 }
 0xa31   :  { %1205 = vtanh.f32 %v622_v62  ;;  %v1072_v16 = vmul.f32 -1.442695, %v622_v62 }
 0xa32   :  { %1207 = vpow2.f32 %v1071_v3 }
 0xa3b   :  { %v1206_v2 = vpop.eup %1205 }
 0xa3c   :  { %641 = vrot.lane.b32.xlu0 %v1206_v2, %s1254_s3  ;;  %v1208_v4 = vpop.eup %1207 }
 0xa3d   :  { %v632_v5 = vadd.f32 1.0, %v1208_v4 }
 0xa3f   :  { %1209 = vrcp.f32 %v632_v5 }
 0xa49   :  { %v1210_v6 = vpop.eup %1209 }
 0xa4a   :  { %v639_v23 = vmul.f32 %v1210_v6, %v570_v48 }
 0xaae   :  { %v642_v21 = vpop.permute.xlu0 %641 }
 0xaaf   :  { %v644_v7 = vmul.f32 %v1210_v6, %v642_v21 }
 0xab1   :  { %646 = vrot.lane.b32.xlu1 %v644_v7, %s1254_s3 }
 0xb23   :  { %v647_v8 = vpop.permute.xlu1 %646 }
 0xb24   :  { %v649_v10 = vadd.f32 %v647_v8, %v639_v23 }
 0xb26   :  { %1211 = vtanh.f32 %v649_v10 }
 0xb27   :  { %1213 = vpow2.f32 %v1072_v16  ;;  %v196_v16 = vadd.f32 %v1420_v37, %v1422_v38  ;;  %v1153_v37 = vld [vmem:[%s1597_s4] sm:$0xff]  }
 0xb28   :  { %1099 = vmatprep.subr.bf16.mxu0 %v1153_v37 }
 0xb30   :  { %v1212_v11 = vpop.eup %1211 }
 0xb31   :  { %652 = vrot.lane.b32.xlu0 %v1212_v11, %s1254_s3  ;;  %v1214_v20 = vpop.eup %1213  ;;  %v194_v11 = vadd.f32 %v1416_v35, %v1418_v36 }
 0xb32   :  { %v633_v22 = vadd.f32 1.0, %v1214_v20 }
 0xb34   :  { %1215 = vrcp.f32 %v633_v22 }
 0xb3e   :  { %v1216_v24 = vpop.eup %1215 }
 0xba3   :  { %v653_v27 = vpop.permute.xlu0 %652 }
 0xba4   :  { %v655_v26 = vmul.f32 %v1216_v24, %v653_v27 }
 0xba6   :  { %656 = vst.msk [vmem:[#allocation3 + $0x20] sm:$0xff] %vm338_vm1, %v655_v26  ;;  %v660_v29 = vpack.c.bf16 %v655_v26, %v655_v26 }
 0xba7   :  { %657 = vst.msk [vmem:[#allocation3 + $0x18] sm:$0xff] %vm340_vm2, %v655_v26 }
 0xba8   :  { %1073 = vmatmul.mubr.msk.bf16.vlgmr.msra.gmra.mrb[20].mxu1 %vm112_vm0, %v660_v29 }
 0xba9   :  { %823 = vmatpush1.bf16.msra.mxu1 %v1330_v12  ;;  %854 = vmatprep.mubr.bf16.mxu1 %v1253_v1  ;;  %v186_v12 = vadd.f32 %v1407_v28, %v1422_v38 }
 0xbaa   :  { %824 = vmatprep.subr.bf16.mxu1 %v1336_v13 }
 0xbad   :  { %825 = vmatpush1.bf16.msra.mxu1 %v1345_v14 }
 0xbae   :  { %826 = vmatprep.subr.bf16.mxu1 %v1352_v15 }
 0xbb1   :  { %827 = vmatpush1.bf16.msra.mxu1 %v1364_v17 }
 0xbb2   :  { %828 = vmatprep.subr.bf16.mxu1 %v1370_v18 }
 0xbb5   :  { %829 = vmatpush1.bf16.msra.mxu1 %v1379_v19 }
 0xc7b   :  { %v698_v31 = vpop.f32.mrb[20].mxu1 }
 0xc7c   :  { %v699_v1 = vadd.f32 %v698_v31, %v184_v30  ;;  %v700_v32 = vpop.f32.mrb[21].mxu1 }
 0xc7d   :  { %v701_v13 = vadd.f32 %v700_v32, %v186_v12  ;;  %v702_v39 = vpop.f32.mrb[22].mxu1 }
 0xc7e   :  { %v703_v14 = vpop.f32.mrb[23].mxu1  ;;  %v1074_v17 = vmul.f32 -1.442695, %v699_v1  ;;  %v1154_v39 = vld [vmem:[%s1597_s4 + $0x8] sm:$0xff]  }
 0xc7f   :  { %1217 = vtanh.f32 %v701_v13  ;;  %v1075_v43 = vmul.f32 -1.442695, %v701_v13 }
 0xc80   :  { %1219 = vpow2.f32 %v1074_v17  ;;  %v1156_v17 = vld [vmem:[%s1597_s4 + $0x18] sm:$0xff]  }
 0xc89   :  { %v1218_v15 = vpop.eup %1217 }
 0xc8a   :  { %720 = vrot.lane.b32.xlu1 %v1218_v15, %s1254_s3  ;;  %v1220_v18 = vpop.eup %1219  ;;  %v1155_v15 = vld [vmem:[%s1597_s4 + $0x10] sm:$0xff]  }
 0xc8b   :  { %v711_v19 = vadd.f32 1.0, %v1220_v18 }
 0xc8d   :  { %1221 = vrcp.f32 %v711_v19 }
 0xc97   :  { %v1222_v40 = vpop.eup %1221 }
 0xc98   :  { %v718_v28 = vmul.f32 %v1222_v40, %v649_v10 }
 0xcfc   :  { %v721_v25 = vpop.permute.xlu1 %720 }
 0xcfd   :  { %v723_v41 = vmul.f32 %v1222_v40, %v721_v25 }
 0xcff   :  { %725 = vrot.lane.b32.xlu0 %v723_v41, %s1254_s3 }
 0xd71   :  { %v726_v42 = vpop.permute.xlu0 %725 }
 0xd72   :  { %v728_v9 = vadd.f32 %v726_v42, %v718_v28 }
 0xd74   :  { %1223 = vtanh.f32 %v728_v9 }
 0xd75   :  { %1225 = vpow2.f32 %v1075_v43 }
 0xd7e   :  { %v1224_v45 = vpop.eup %1223 }
 0xd7f   :  { %731 = vrot.lane.b32.xlu1 %v1224_v45, %s1254_s3  ;;  %v1226_v46 = vpop.eup %1225 }
 0xd80   :  { %v712_v44 = vadd.f32 1.0, %v1226_v46 }
 0xd82   :  { %1227 = vrcp.f32 %v712_v44 }
 0xd8c   :  { %v1228_v47 = vpop.eup %1227 }
 0xdf1   :  { %v732_v48 = vpop.permute.xlu1 %731 }
 0xdf2   :  { %v734_v49 = vmul.f32 %v1228_v47, %v732_v48  ;;  %v898_v47 = vld [vmem:[#allocation3 + $0x18] sm:$0xff] }
 0xdf4   :  { %735 = vst.msk [vmem:[#allocation3 + $0x28] sm:$0xff] %vm338_vm1, %v734_v49  ;;  %v739_v50 = vpack.c.bf16 %v734_v49, %v734_v49 }
 0xdf5   :  { %736 = vst.msk [vmem:[#allocation3 + $0x10] sm:$0xff] %vm340_vm2, %v734_v49  ;;  %v899_v49 = vld [vmem:[#allocation3 + $0x20] sm:$0xff] }
 0xdf6   :  { %1076 = vmatmul.mubr.msk.bf16.vlgmr.msra.gmra.mrb[16].mxu0 %vm112_vm0, %v739_v50 }
 0xdf7   :  { %1100 = vmatpush3.bf16.msra.mxu0 %v1153_v37 }
 0xdf8   :  { %1101 = vmatprep.subr.bf16.mxu0 %v1154_v39 }
 0xdfb   :  { %1102 = vmatpush3.bf16.msra.mxu0 %v1154_v39  ;;  %v900_v46 = vld [vmem:[#allocation3 + $0x28] sm:$0xff] }
 0xdfc   :  { %1103 = vmatprep.subr.bf16.mxu0 %v1155_v15  ;;  %v905_v50 = vpack.c.bf16 %v900_v46, %v899_v49 }
 0xdff   :  { %1104 = vmatpush3.bf16.msra.mxu0 %v1155_v15 }
 0xe00   :  { %1105 = vmatprep.subr.bf16.mxu0 %v1156_v17 }
 0xe03   :  { %1106 = vmatpush3.bf16.msra.mxu0 %v1156_v17 }
 0xec9   :  { %v777_v53 = vpop.f32.mrb[16].mxu0 }
 0xeca   :  { %v778_v54 = vadd.f32 %v777_v53, %v190_v51  ;;  %v779_v55 = vpop.f32.mrb[17].mxu0 }
 0xecb   :  { %v780_v56 = vadd.f32 %v779_v55, %v192_v52  ;;  %v781_v57 = vpop.f32.mrb[18].mxu0 }
 0xecc   :  { %v782_v58 = vpop.f32.mrb[19].mxu0  ;;  %v1077_v60 = vmul.f32 -1.442695, %v778_v54  ;;  %v1082_v54 = vld [vmem:[%s1598_s5] ss:$0 sm:$0xff] }
 0xecd   :  { %1229 = vtanh.f32 %v780_v56  ;;  %v1078_v5 = vmul.f32 -1.442695, %v780_v56 }
 0xece   :  { %1231 = vpow2.f32 %v1077_v60 }
 0xed7   :  { %v1230_v59 = vpop.eup %1229 }
 0xed8   :  { %799 = vrot.lane.b32.xlu0 %v1230_v59, %s1254_s3  ;;  %v1232_v61 = vpop.eup %1231 }
 0xed9   :  { %v790_v62 = vadd.f32 1.0, %v1232_v61 }
 0xedb   :  { %1233 = vrcp.f32 %v790_v62 }
 0xee5   :  { %v1234_v63 = vpop.eup %1233 }
 0xee6   :  { %v797_v34 = vmul.f32 %v1234_v63, %v728_v9  ;;  %v897_v9 = vld [vmem:[#allocation3 + $0x10] sm:$0xff] }
 0xee7   :  { %v904_v48 = vpack.c.bf16 %v898_v47, %v897_v9 }
 0xf4a   :  { %v800_v33 = vpop.permute.xlu0 %799 }
 0xf4b   :  { %v802_v0 = vmul.f32 %v1234_v63, %v800_v33 }
 0xf4d   :  { %804 = vrot.lane.b32.xlu1 %v802_v0, %s1254_s3 }
 0xfbf   :  { %v805_v2 = vpop.permute.xlu1 %804 }
 0xfc0   :  { %v807_v3 = vadd.f32 %v805_v2, %v797_v34 }
 0xfc2   :  { %1235 = vtanh.f32 %v807_v3 }
 0xfc3   :  { %1237 = vpow2.f32 %v1078_v5 }
 0xfcc   :  { %v1236_v4 = vpop.eup %1235 }
 0xfcd   :  { %810 = vrot.lane.b32.xlu0 %v1236_v4, %s1254_s3  ;;  %v1238_v6 = vpop.eup %1237 }
 0xfce   :  { %v791_v21 = vadd.f32 1.0, %v1238_v6 }
 0xfd0   :  { %1239 = vrcp.f32 %v791_v21 }
 0xfda   :  { %v1240_v7 = vpop.eup %1239 }
0x103f   :  { %v811_v23 = vpop.permute.xlu0 %810 }
0x1040   :  { %v813_v8 = vmul.f32 %v1240_v7, %v811_v23 }
0x1042   :  { %814 = vst.msk [vmem:[#allocation3 + $0x30] sm:$0xff] %vm338_vm1, %v813_v8  ;;  %v818_v10 = vpack.c.bf16 %v813_v8, %v813_v8 }
0x1043   :  { %815 = vst.msk [vmem:[#allocation3 + $0x8] sm:$0xff] %vm340_vm2, %v813_v8 }
0x1044   :  { %1079 = vmatmul.mubr.msk.bf16.vlgmr.msra.gmra.mrb[24].mxu1 %vm112_vm0, %v818_v10 }
0x1049   :  { %v901_v52 = vld [vmem:[#allocation3 + $0x30] sm:$0xff] }
0x104a   :  { %v896_v43 = vld [vmem:[#allocation3 + $0x8] sm:$0xff] }
0x1117   :  { %v856_v20 = vpop.f32.mrb[24].mxu1 }
0x1118   :  { %v857_v22 = vadd.f32 %v856_v20, %v194_v11  ;;  %v858_v24 = vpop.f32.mrb[25].mxu1 }
0x1119   :  { %v859_v27 = vadd.f32 %v858_v24, %v196_v16  ;;  %v860_v26 = vpop.f32.mrb[26].mxu1 }
0x111a   :  { %v861_v29 = vpop.f32.mrb[27].mxu1  ;;  %v1080_v12 = vmul.f32 -1.442695, %v857_v22 }
0x111b   :  { %1241 = vtanh.f32 %v859_v27  ;;  %v1081_v19 = vmul.f32 -1.442695, %v859_v27 }
0x111c   :  { %1243 = vpow2.f32 %v1080_v12 }
0x1125   :  { %v1242_v30 = vpop.eup %1241 }
0x1126   :  { %878 = vrot.lane.b32.xlu1 %v1242_v30, %s1254_s3  ;;  %v1244_v31 = vpop.eup %1243 }
0x1127   :  { %v869_v1 = vadd.f32 1.0, %v1244_v31 }
0x1129   :  { %1245 = vrcp.f32 %v869_v1 }
0x1133   :  { %v1246_v32 = vpop.eup %1245 }
0x1134   :  { %v876_v38 = vmul.f32 %v1246_v32, %v807_v3 }
0x1198   :  { %v879_v35 = vpop.permute.xlu1 %878 }
0x1199   :  { %v881_v36 = vmul.f32 %v1246_v32, %v879_v35 }
0x119b   :  { %883 = vrot.lane.b32.xlu0 %v881_v36, %s1254_s3 }
0x120d   :  { %v884_v13 = vpop.permute.xlu0 %883 }
0x120e   :  { %v886_v14 = vadd.f32 %v884_v13, %v876_v38 }
0x1210   :  { %1247 = vtanh.f32 %v886_v14 }
0x1211   :  { %1249 = vpow2.f32 %v1081_v19 }
0x121a   :  { %v1248_v18 = vpop.eup %1247 }
0x121b   :  { %889 = vrot.lane.b32.xlu1 %v1248_v18, %s1254_s3  ;;  %v1250_v40 = vpop.eup %1249 }
0x121c   :  { %v870_v25 = vadd.f32 1.0, %v1250_v40 }
0x121e   :  { %1251 = vrcp.f32 %v870_v25 }
0x1228   :  { %v1252_v41 = vpop.eup %1251 }
0x128d   :  { %v890_v28 = vpop.permute.xlu1 %889 }
0x128e   :  { %v892_v42 = vmul.f32 %v1252_v41, %v890_v28 }
0x1290   :  { %893 = vst.msk [vmem:[#allocation3 + $0x38] sm:$0xff] %vm338_vm1, %v892_v42 }
0x1291   :  { %894 = vst.msk [vmem:[#allocation3] sm:$0xff] %vm340_vm2, %v892_v42 }
0x1297   :  { %v902_v51 = vld [vmem:[#allocation3 + $0x38] sm:$0xff] }
0x1298   :  { %v895_v45 = vld [vmem:[#allocation3] sm:$0xff]  ;;  %v906_v53 = vpack.c.bf16 %v902_v51, %v901_v52 }
0x1299   :  { %v903_v44 = vpack.c.bf16 %v896_v43, %v895_v45 }
0x129b   :  { %1107 = vmatprep.mubr.msk.bf16.mxu0 %vm112_vm0, %v903_v44 }
0x129c   :  { %1108 = vmatmul.mubr.msk.bf16.vlgmr.msra.gmra.mrb[20].mxu0 %vm112_vm0, %v904_v48 }
0x129d   :  { %1111 = vmatprep.mubr.msk.bf16.mxu0 %vm112_vm0, %v905_v50 }
0x12a4   :  { %1112 = vmatmul.mubr.msk.bf16.gmra.mrb[24].mxu0 %vm112_vm0, %v906_v53 }
0x136f   :  { %v1109_v55 = vpop.f32.mrb[20].mxu0 }
0x1370   :  { %v1001_v56 = vadd.f32 %v1109_v55, %v1082_v54  ;;  %v992_v57 = vpop.f32.mrb[21].mxu0 }
0x1371   :  { %v993_v58 = vadd.f32 %v1082_v54, %v992_v57  ;;  %v1110_v59 = vpop.f32.mrb[22].mxu0 }
0x1372   :  { %1025 = vst [vmem:[%s1599_s6 + $0x10] sm:$0xff] %v1001_v56  ;;  %v1004_v60 = vadd.f32 %v1110_v59, %v1082_v54  ;;  %v995_v61 = vpop.f32.mrb[23].mxu0 }
0x1373   :  { %1023 = vst [vmem:[%s1599_s6] sm:$0xff] %v993_v58  ;;  %v996_v62 = vadd.f32 %v1082_v54, %v995_v61 }
0x1374   :  { %1026 = vst [vmem:[%s1599_s6 + $0x18] sm:$0xff] %v1004_v60 }
0x1375   :  { %1024 = vst [vmem:[%s1599_s6 + $0x8] sm:$0xff] %v996_v62 }
0x1377   :  { %v1113_v63 = vpop.f32.mrb[24].mxu0 }
0x1378   :  { %v1017_v33 = vadd.f32 %v1113_v63, %v1082_v54  ;;  %v1008_v0 = vpop.f32.mrb[25].mxu0 }
0x1379   :  { %v1009_v34 = vadd.f32 %v1082_v54, %v1008_v0  ;;  %v1114_v2 = vpop.f32.mrb[26].mxu0 }
0x137a   :  { %1029 = vst [vmem:[%s1599_s6 + $0x30] sm:$0xff] %v1017_v33  ;;  %v1020_v3 = vadd.f32 %v1114_v2, %v1082_v54  ;;  %v1011_v4 = vpop.f32.mrb[27].mxu0 }
0x137b   :  { %1027 = vst [vmem:[%s1599_s6 + $0x20] sm:$0xff] %v1009_v34  ;;  %v1012_v5 = vadd.f32 %v1082_v54, %v1011_v4 }
0x137c   :  { %1030 = vst [vmem:[%s1599_s6 + $0x38] sm:$0xff] %v1020_v3 }
0x137d   :  { %1028 = vst [vmem:[%s1599_s6 + $0x28] sm:$0xff] %v1012_v5 }

</bundles_post_ra>
